<compile_context>
chip_gen: v7x
topology: tpu7x:2x2x1
jax: 0.10.0
libtpu: 0.0.40
codegen_flags: <defaults>
</compile_context>

<pallas_src>
import jax
import jax.numpy as jnp
from jax.experimental import pallas as pl
from jax.experimental.pallas import tpu as pltpu

_LANE = 128


def _sse_kernel(x_ref, w_ref, b_ref, o_ref):
    # x_ref / o_ref: (Bt, C, T_HW) tile.  w_ref: (1, C, 1) VMEM.  b_ref: (1,) SMEM.
    x = x_ref[...]
    w = w_ref[...].astype(jnp.float32)                     # (1, C, 1)
    # 1x1 conv == per-pixel channel reduction; accumulate in f32 (bf16-safe).
    pre = jnp.sum(x.astype(jnp.float32) * w, axis=1, keepdims=True)   # (Bt, 1, T)
    gate = jax.nn.sigmoid(pre + b_ref[0])                  # (Bt, 1, T) f32 gate
    # Full-tile multiply in the input dtype (halves VALU work / vreg bytes for
    # bf16 on v6e/v7x); only the small gate tile is f32.
    o_ref[...] = x * gate.astype(x.dtype)


def _vmem_limit_bytes():
    # Generation-aware scoped-VMEM limit with headroom:
    #   v5e/v6e (128 MiB physical) -> 64 MiB,  v7x (64 MiB physical) -> 32 MiB.
    try:
        cap = int(pltpu.get_tpu_info().vmem_capacity_bytes)
    except Exception:
        cap = 64 * 1024 * 1024
    return max(16 * 1024 * 1024, min(64 * 1024 * 1024, cap // 2))


def _select_tiles(B, C, HW, itemsize, vmem_limit):
    """Pick (bt, t_hw): batch-fold and lane-tile sizes."""
    # Sublane packing multiple: f32 -> 8, bf16 -> 16, int8 -> 32.
    sub_mult = 8 * max(1, 4 // itemsize)
    c_pad = pl.cdiv(C, sub_mult) * sub_mult                # padded channel footprint

    def est_vmem(bt, t):
        io = 4 * bt * c_pad * t * itemsize                 # in + out, double-buffered
        tmp = bt * c_pad * t * 4                           # f32 product temp (reduce)
        gate = bt * 8 * t * 4                              # f32 gate tile (sublane-padded)
        return io + tmp + gate

    budget = int(vmem_limit * 0.75)

    # Spatial tile: lane multiple, as large as the budget allows (<= 2048).
    t_hw = min(2048, pl.cdiv(HW, _LANE) * _LANE)
    while t_hw > _LANE and est_vmem(1, t_hw) > budget:
        t_hw -= _LANE

    # Fold batch until the block is ~1 MiB (amortise per-grid-step overhead).
    target = 1 << 20
    bt = max(1, min(B, -(-target // (c_pad * t_hw * itemsize))))
    while bt > 1 and est_vmem(bt, t_hw) > budget:
        bt -= 1

    # Keep >= 2 parallel blocks when possible so megacore (v7x) can split work.
    if pl.cdiv(B, bt) == 1 and pl.cdiv(HW, t_hw) == 1:
        if B >= 2:
            bt = -(-B // 2)
        elif HW > _LANE:
            t_hw = pl.cdiv(pl.cdiv(HW, _LANE), 2) * _LANE

    return bt, t_hw


def spatial_se_layer(x, conv_weight, conv_bias):
    """x: (B, C, H, W). conv_weight: (1, C, 1, 1). conv_bias: (1,)."""
    B, C, H, W = x.shape
    HW = H * W
    x_flat = x.reshape(B, C, HW)                           # metadata-only reshape

    itemsize = jnp.dtype(x.dtype).itemsize
    vmem_limit = _vmem_limit_bytes()
    bt, t_hw = _select_tiles(B, C, HW, itemsize, vmem_limit)

    w = conv_weight.reshape(1, C, 1).astype(jnp.float32)
    b = conv_bias.reshape(1).astype(jnp.float32)

    # cdiv grid: no host-side pad, no post-slice; the partial last block along
    # either axis is masked by Pallas (per-lane independent math makes it safe).
    grid = (pl.cdiv(B, bt), pl.cdiv(HW, t_hw))

    out_flat = pl.pallas_call(
        _sse_kernel,
        out_shape=jax.ShapeDtypeStruct((B, C, HW), x.dtype),
        grid=grid,
        in_specs=[
            pl.BlockSpec((bt, C, t_hw), lambda i, j: (i, 0, j)),        # x tile
            pl.BlockSpec((1, C, 1), lambda i, j: (0, 0, 0)),            # conv weight
            pl.BlockSpec(memory_space=pltpu.MemorySpace.SMEM),          # conv bias (scalar)
        ],
        out_specs=pl.BlockSpec((bt, C, t_hw), lambda i, j: (i, 0, j)),
        compiler_params=pltpu.CompilerParams(
            dimension_semantics=("parallel", "parallel"),
            vmem_limit_bytes=vmem_limit,
        ),
    )(x_flat, w, b)

    return out_flat.reshape(B, C, H, W)


def _reference(x, conv_weight, conv_bias):
    # Pure-JAX reference of the PyTorch forward (weights=None branch).
    w = conv_weight.reshape(1, -1, 1, 1)
    pre = jnp.sum(x.astype(jnp.float32) * w, axis=1, keepdims=True)
    pre = pre + conv_bias.reshape(1, 1, 1, 1)
    gate = jax.nn.sigmoid(pre)
    return (x.astype(jnp.float32) * gate).astype(x.dtype)


if __name__ == "__main__":
    B, C, H, W = 2, 4, 16, 16
    key = jax.random.PRNGKey(0)
    kx, kw, kb = jax.random.split(key, 3)

    x = jax.random.normal(kx, (B, C, H, W), dtype=jnp.float32)
    # Conv2d(num_channels, 1, 1): weight (1, C, 1, 1), bias (1,) — deterministic init.
    conv_weight = jax.random.normal(kw, (1, C, 1, 1), dtype=jnp.float32) * 0.1
    conv_bias = jax.random.normal(kb, (1,), dtype=jnp.float32) * 0.1

    y = spatial_se_layer(x, conv_weight, conv_bias)
    y = jax.block_until_ready(y)

    y_ref = _reference(x, conv_weight, conv_bias)
    assert y.shape == x.shape and y.dtype == x.dtype
    assert jnp.allclose(y, y_ref, atol=1e-5, rtol=1e-5)

    print("KERNEL_OK")
</pallas_src>

<mosaic_0001>
module attributes {stable_mosaic.version = 11 : i64} {
  func.func @_sse_kernel(%arg0: i32, %arg1: i32, %arg2: memref<1x4x256xf32, #tpu.memory_space<vmem>>, %arg3: memref<1x4x1xf32, #tpu.memory_space<vmem>>, %arg4: memref<1xf32, #tpu.memory_space<smem>>, %arg5: memref<1x4x256xf32, #tpu.memory_space<vmem>>) attributes {dimension_semantics = [#tpu.dimension_semantics<parallel>, #tpu.dimension_semantics<parallel>], iteration_bounds = array<i64: 2, 1>, scalar_prefetch = 0 : i64, scratch_operands = 0 : i64, tpu.core_type = #tpu.core_type<tc>, window_params = [{transform_indices = @transform_0, window_bounds = array<i64: 1, 4, 256>}, {pipeline_mode = #tpu.pipeline_mode<synchronous>, transform_indices = @transform_1, window_bounds = array<i64: 1, 4, 1>}, {transform_indices = @transform_2, window_bounds = array<i64: 1>}, {transform_indices = @transform_3, window_bounds = array<i64: 1, 4, 256>}]} {
    %c0 = arith.constant 0 : index
    %c0_0 = arith.constant 0 : index
    %c0_1 = arith.constant 0 : index
    %0 = vector.load %arg2[%c0, %c0_0, %c0_1] : memref<1x4x256xf32, #tpu.memory_space<vmem>>, vector<1x4x256xf32>
    %c0_2 = arith.constant 0 : index
    %c0_3 = arith.constant 0 : index
    %c0_4 = arith.constant 0 : index
    %1 = vector.load %arg3[%c0_2, %c0_3, %c0_4] : memref<1x4x1xf32, #tpu.memory_space<vmem>>, vector<1x4x1xf32>
    %2 = vector.broadcast %1 : vector<1x4x1xf32> to vector<1x4x256xf32>
    %3 = arith.mulf %0, %2 : vector<1x4x256xf32>
    %cst = arith.constant dense<0.000000e+00> : vector<1x256xf32>
    %4 = vector.multi_reduction <add>, %3, %cst [1] : vector<1x4x256xf32> to vector<1x256xf32>
    %5 = vector.shape_cast %4 : vector<1x256xf32> to vector<1x1x256xf32>
    %c0_5 = arith.constant 0 : index
    %6 = memref.load %arg4[%c0_5] : memref<1xf32, #tpu.memory_space<smem>>
    %7 = vector.broadcast %6 : f32 to vector<1x1x256xf32>
    %8 = arith.addf %5, %7 : vector<1x1x256xf32>
    %9 = arith.negf %8 : vector<1x1x256xf32>
    %10 = math.exp %9 : vector<1x1x256xf32>
    %cst_6 = arith.constant 1.000000e+00 : f32
    %11 = vector.broadcast %cst_6 : f32 to vector<1x1x256xf32>
    %12 = arith.addf %11, %10 : vector<1x1x256xf32>
    %13 = arith.divf %11, %12 : vector<1x1x256xf32>
    %14 = vector.broadcast %13 : vector<1x1x256xf32> to vector<1x4x256xf32>
    %15 = arith.mulf %0, %14 : vector<1x4x256xf32>
    %c0_7 = arith.constant 0 : index
    %c0_8 = arith.constant 0 : index
    %c0_9 = arith.constant 0 : index
    %16 = vector.load %arg5[%c0_7, %c0_8, %c0_9] : memref<1x4x256xf32, #tpu.memory_space<vmem>>, vector<1x4x256xf32>
    tpu.vector_store %arg5[%c0_7, %c0_8, %c0_9], %15 {strides = array<i32>} : memref<1x4x256xf32, #tpu.memory_space<vmem>>, vector<1x4x256xf32>,
    return
  }
  func.func @transform_0(%arg0: i32, %arg1: i32) -> (i32, i32, i32) {
    %c0_i32 = arith.constant 0 : i32
    %c0_i32_0 = arith.constant 0 : i32
    return %arg0, %c0_i32, %arg1 : i32, i32, i32
  }
  func.func @transform_1(%arg0: i32, %arg1: i32) -> (i32, i32, i32) {
    %c0_i32 = arith.constant 0 : i32
    %c0_i32_0 = arith.constant 0 : i32
    %c0_i32_1 = arith.constant 0 : i32
    %c0_i32_2 = arith.constant 0 : i32
    return %c0_i32, %c0_i32_0, %c0_i32_1 : i32, i32, i32
  }
  func.func @transform_2(%arg0: i32, %arg1: i32) -> i32 {
    %c0_i32 = arith.constant 0 : i32
    %c0_i32_0 = arith.constant 0 : i32
    return %c0_i32 : i32
  }
  func.func @transform_3(%arg0: i32, %arg1: i32) -> (i32, i32, i32) {
    %c0_i32 = arith.constant 0 : i32
    %c0_i32_0 = arith.constant 0 : i32
    return %arg0, %c0_i32, %arg1 : i32, i32, i32
  }
}

</mosaic_0001>

<bundles_post_ra>
// kernel: tpu_custom_call.1
= control target key start
LH: loop header
LB: loop body
LE: loop exit
PB: predicated region body
PF: predicated region fallthrough
CT: control target
= control target key end

     0   :  { %s776_s0 = inlined_call_operand.hbm [shape: f32[2,4,256], index: 0, kind: input, shape index: {}]   ;;  %s777_s1 = inlined_call_operand.vmem [shape: f32[1,4,1], index: 1, kind: input, shape index: {}]   ;;  %s778_s2 = inlined_call_operand.<no memory space> [shape: f32[1], index: 2, kind: input, shape index: {}]   ;;  %s779_s3 = inlined_call_operand.hbm [shape: f32[2,4,256], index: 3, kind: output, shape index: {}]  }
   0x1   :  { %8 = sst [smem:[#allocation2]] %s778_s2 }
   0x2   :  { %9 = vsyncpa [#allocation4], 0 }
   0x3   :  { %11 = vsyncpa [#allocation4 + $0x1], 0 }
   0x4   :  { %12 = vsyncpa [#allocation5], 0 }
   0x5   :  { %14 = vsyncpa [#allocation5 + $0x1], 0  ;;  %s597_s14 = smov 0   ;;  %s599_s15 = smov 0  }
   0x6   :  { %s601_s16 = smov 0   ;;  %s603_s17 = smov 0  }
   0x7   :  { %s605_s18 = smov 0   ;;  %s607_s19 = smov 0  }
   0x8 LB: > { %s364_s2 = sadd.s32 4294967295, %s568_s19   ;;  %s365_s20 = sadd.s32 4294967294, %s568_s19   ;;  %s568_s19 = sphi %s607_s19, %s20_s19   ;;  %s564_s18 = sphi %s605_s18, %s795_s18   ;;  %s560_s17 = sphi %s603_s17, %s794_s17   ;;  %s556_s16 = sphi %s601_s16, %s793_s16   ;;  %s552_s15 = sphi %s599_s15, %s792_s15   ;;  %s548_s14 = sphi %s597_s14, %s791_s14  }
   0x9   : > { %s32_s21 = sadd.s32 1, %s564_s18  ;;  %s41_s22 = sadd.s32 1, %s556_s16 }
   0xa   : > { %p34_p0 = scmp.ge.s32.totalorder %s32_s21, 2  ;;  %p48_p1 = scmp.ne.s32.totalorder %s556_s16, %s552_s15 }
   0xb   : > { %p49_p2 = scmp.eq.s32.totalorder %s568_s19, 0  ;;  %p54_p3 = scmp.ne.s32.totalorder %s552_s15, %s548_s14 }
   0xc   : > { %s797_s21 = smov (%p34_p0, %s32_s21), 0  ;;  %p55_p5 = scmp.eq.s32.totalorder %s364_s2, 0 }
   0xd   : > { %p638_p4 = por %p49_p2, %p48_p1  ;;  %s36_s24 = ssub.s32 %s564_s18, %s797_s21 }
   0xe   : > { %p122_p6 = scmp.eq.s32.totalorder %s364_s2, 1  ;;  %p39_p7 = scmp.eq.s32.totalorder %s36_s24, 0 }
   0xf   : > { %p644_p8 = por %p55_p5, %p54_p3  ;;  %p128_p10 = scmp.eq.s32.totalorder %s365_s20, 1 }
  0x10   : > { %p648_p9 = por %p122_p6, %p48_p1  ;;  %p395_p13 = scmp.lt.s32.totalorder %s568_s19, 2 }
  0x11   : > { %s653_s27 = scalar_select %p39_p7, %s556_s16, %s41_s22  }
  0x12   : > { %s783_s26 = scalar_select %p648_p9, 1, 0 }
  0x13   : > { %p655_p11 = por %p128_p10, %p54_p3  ;;  %s154_s29 = sand.u32 1, %s556_s16  }
  0x14   : > { %s368_s30 = sshll.u32 %s154_s29, 3  ;;  %s381_s4 = sshll.u32 %s564_s18, 7 }
  0x15   : > { %s784_s28 = scalar_select %p655_p11, 1, 0 }
  0x16   : > { %s666_s7 = scalar_lea.hbm %s776_s0, %s381_s4  ;;  %s158_s8 = scalar_lea.vmem [#allocation3], %s368_s30 }
  0x17   : > { %s168_s9 = sshll.u32 %s158_s8, 4  ;;  %p672_p0 = pnand %p395_p13, %p638_p4  ;;  %s668_s9 = int_to_ptr.vmem [resolvable:$true] %s168_s9 }
  0x18   : > { %s155_s11 = scalar_lea.sflag [#allocation4], %s154_s29  ;;  %s456_s12 = scalar_lea.hbm %s666_s7, 128 }
  0x19   : > { %p457_p3 = scmp.ne.s32.totalorder %s666_s7, %s456_s12  ;;  %p458_p5 = pneg %p672_p0 }
  0x1a   : > { %s461_s20 = scalar_lea.hbm %s776_s0, 256  ;;  %p462_p4 = scmp.lt.u32.totalorder %s666_s7, %s776_s0 }
  0x1b   : > { %p459_p6 = pnand %p458_p5, %p457_p3  ;;  %p463_p10 = scmp.lt.u32.totalorder %s461_s20, %s456_s12 }
  0x1c   : > { %p465_p12 = scmp.lt.u32.totalorder %s456_s12, %s666_s7 }
  0x1d   : > { %p460_p7 = pneg %p459_p6  ;;  %p464_p13 = por %p463_p10, %p462_p4 }
  0x1f   : > { %p466_p1 = por %p465_p12, %p464_p13 }
  0x21   : > { %p467_p2 = pnand %p466_p1, %p460_p7 }
  0x23   : > { %470 = shalt.err (!%p467_p2)
}
  0x24   : > { %s471_s24 = scalar_lea.vmem %s668_s9, 128  ;;  %s570_s29 = smov [#allocation3]  }
  0x25   : > { %p472_p3 = scmp.ne.s32.totalorder %s668_s9, %s471_s24  ;;  %s476_s30 = sshll.u32 %s570_s29, 4  ;;  %s477_s30 = int_to_ptr.vmem [resolvable:$false] %s476_s30 }
  0x26   : > { %s478_s4 = scalar_lea.vmem %s477_s30, 256  ;;  %p479_p9 = scmp.lt.s32.totalorder %s668_s9, %s477_s30 }
  0x27   : > { %p474_p6 = pnand %p472_p3, %p458_p5  ;;  %p480_p4 = scmp.lt.s32.totalorder %s478_s4, %s471_s24 }
  0x29   : > { %p475_p11 = pneg %p474_p6  ;;  %p481_p10 = por %p480_p4, %p479_p9 }
  0x2b   : > { %p482_p12 = pnand %p481_p10, %p475_p11 }
  0x2d   : > { %485 = shalt.err (!%p482_p12)
}
  0x2e   : > { %390 = dma.hbm_to_vmem [thread:$0]  (!%p672_p0), %s666_s7, 128, %s668_s9, %s155_s11  }
  0x2f   : > { %p786_p1 = scmp.lt.s32.totalorder %s568_s19, 3  ;;  %p787_p2 = scmp.ge.s32.totalorder %s568_s19, 1 }
  0x31   : > { %p174_p5 = pnand %p787_p2, %p786_p1 }
  0x32   : > { %s708_s5 = sand.u32 (!%p174_p5), 1, %s552_s15  }
  0x33   : > { %177 = sbr.rel (%p174_p5) target bundleno = 254 (0xfe), region = 32  ;;  %s372_s6 = sshll.u32 (!%p174_p5), %s708_s5, 3 }
  0x34   : > { %s180_s8 = scalar_lea.sflag (!%p174_p5), [#allocation4], %s708_s5  ;;  %s183_s10 = scalar_lea.vmem (!%p174_p5), [#allocation3], %s372_s6 }
  0x3a   : > { %539 = dma.done.wait (%p644_p8), %s180_s8, 128  }
  0x3b   : > { %541 = vsyncadd (%p644_p8), %s180_s8, 4294967168  ;;  %v571_v0 = vmov 0   ;;  %v209_v1 = vld [vmem:[%s777_s1] sm:$0xf]  ;;  %v572_v2 = vmov 839922192   ;;  %v217_v4 = vlaneseq }
  0x3c   : > { %447 = vset.pattern.permute.xlu0 %v571_v0  ;;  %v215_v3 = vunpack.c.l.s4 %v572_v2  ;;  %v208_v9 = vld [vmem:[%s183_s10] sm:$0xff]  ;;  %vm226_vm0 = vcmask 1043456   ;;  %s241_s25 = sld [smem:[#allocation2]]  ;;  %s382_s11 = sshll.u32 %s560_s17, 7 }
  0x3d   : > { %212 = vperm.xlu0 %447, %v209_v1   ;;  %v218_v6 = vshrl.u32 %v217_v4, 7  ;;  %s205_s12 = scalar_lea.vmem [#allocation6], %s372_s6  ;;  %s727_s22 = scalar_lea.hbm %s779_s3, %s382_s11 }
  0x3e   : > { %v216_v5 = vunpack.c.0.s8 %v215_v3  ;;  %s280_s13 = sshll.u32 %s205_s12, 4  ;;  %s264_s23 = scalar_lea.sflag [#allocation5], %s708_s5  ;;  %s729_s13 = int_to_ptr.vmem [resolvable:$true] %s280_s13 }
  0x3f   : > { %s486_s24 = scalar_lea.vmem %s729_s13, 128  ;;  %p788_p9 = scmp.ne.s32.totalorder %s783_s26, 0 }
  0x40   : > { %v219_v7 = vsub.s32 %v216_v5, %v218_v6  ;;  %p487_p8 = scmp.ne.s32.totalorder %s729_s13, %s486_s24  ;;  %s573_s17 = smov [#allocation6]  }
  0x41   : > { %s490_s29 = sshll.u32 %s573_s17, 4  ;;  %s491_s29 = int_to_ptr.vmem [resolvable:$false] %s490_s29 }
  0x42   : > { %v242_v24 = vstv %s241_s25  ;;  %p488_p11 = pnand %p487_p8, %p788_p9  ;;  %s492_s30 = scalar_lea.vmem %s491_s29, 256 }
  0x43   : > { %p493_p7 = scmp.lt.s32.totalorder %s729_s13, %s491_s29  ;;  %p494_p13 = scmp.lt.s32.totalorder %s492_s30, %s486_s24 }
  0x44   : > { %p489_p0 = pneg %p488_p11 }
  0x45   : > { %p495_p3 = por %p494_p13, %p493_p7 }
  0x47   : > { %p496_p6 = pnand %p495_p3, %p489_p0 }
  0xbc   : > { %v213_v8 = vpop.permute.xlu0 %212 }
  0xbd   : > { %v220_v10 = vrot.slane %v213_v8, %v219_v7 }
  0xbf   : > { %v222_v11 = vmul.f32 %v220_v10, %v208_v9 }
  0xc1   : > { %v224_v12 = vcombine.high %v222_v11, %v222_v11  ;;  %v227_v13 = vsel %vm226_vm0, %v222_v11, 0.0 }
  0xc2   : > { %v228_v14 = vrot.slane %v227_v13, 4 }
  0xc3   : > { %v234_v15 = vsel %vm226_vm0, %v224_v12, 0.0 }
  0xc4   : > { %v229_v16 = vadd.f32 %v228_v14, %v227_v13  ;;  %v235_v17 = vrot.slane %v234_v15, 4 }
  0xc6   : > { %v230_v18 = vrot.slane %v229_v16, 2  ;;  %v236_v19 = vadd.f32 %v235_v17, %v234_v15 }
  0xc8   : > { %v231_v20 = vadd.f32 %v230_v18, %v229_v16  ;;  %v237_v21 = vrot.slane %v236_v19, 2 }
  0xca   : > { %v232_v22 = vrot.slane %v231_v20, 1  ;;  %v238_v23 = vadd.f32 %v237_v21, %v236_v19 }
  0xcc   : > { %v233_v25 = vadd.f32 %v232_v22, %v231_v20  ;;  %v239_v26 = vrot.slane %v238_v23, 1 }
  0xce   : > { %v240_v27 = vadd.f32 %v239_v26, %v238_v23  ;;  %v243_v28 = vadd.f32 %v242_v24, %v233_v25 }
  0xd0   : > { %v244_v29 = vadd.f32 %v242_v24, %v240_v27  ;;  %v374_v30 = vmul.f32 -1.442695, %v243_v28 }
  0xd2   : > { %448 = vpow2.f32 %v374_v30  ;;  %v375_v31 = vmul.f32 -1.442695, %v244_v29 }
  0xd4   : > { %450 = vpow2.f32 %v375_v31 }
  0xdc   : > { %v449_v32 = vpop.eup %448 }
  0xdd   : > { %v251_v33 = vadd.f32 1.0, %v449_v32 }
  0xde   : > { %v451_v34 = vpop.eup %450 }
  0xdf   : > { %v252_v35 = vadd.f32 1.0, %v451_v34  ;;  %452 = vrcp.f32 %v251_v33 }
  0xe1   : > { %454 = vrcp.f32 %v252_v35 }
  0xe9   : > { %v453_v36 = vpop.eup %452 }
  0xeb   : > { %v455_v37 = vpop.eup %454 }
  0xec   : > { %v259_v38 = vcombine.low %v453_v36, %v455_v37 }
  0xee   : > { %v261_v39 = vmul.f32 %v259_v38, %v208_v9 }
  0xf0   : > { %262 = vst [vmem:[%s205_s12] sm:$0xff] %v261_v39 }
  0xf1   : > { %499 = shalt.err (!%p496_p6)
}
  0xf2   : > { %s500_s4 = scalar_lea.hbm %s727_s22, 128  ;;  %s504_s8 = scalar_lea.hbm %s779_s3, 256 }
  0xf3   : > { %p501_p4 = scmp.ne.s32.totalorder %s727_s22, %s500_s4  ;;  %p505_p1 = scmp.lt.u32.totalorder %s727_s22, %s779_s3 }
  0xf4   : > { %p506_p2 = scmp.lt.u32.totalorder %s504_s8, %s500_s4  ;;  %p508_p8 = scmp.lt.u32.totalorder %s500_s4, %s727_s22 }
  0xf5   : > { %p502_p10 = pnand %p501_p4, %p788_p9 }
  0xf6   : > { %p507_p5 = por %p506_p2, %p505_p1 }
  0xf7   : > { %p503_p12 = pneg %p502_p10 }
  0xf8   : > { %p509_p11 = por %p508_p8, %p507_p5 }
  0xfa   : > { %p510_p0 = pnand %p509_p11, %p503_p12 }
  0xfc   : > { %513 = shalt.err (!%p510_p0)
}
  0xfd   : > { %385 = dma.vmem_to_hbm [thread:$0]  (%p788_p9), %s729_s13, 128, %s727_s22, %s264_s23  }
  0xfe PF: > { %s292_s9 = sand.u32 1, %s548_s14   ;;  %p789_p7 = scmp.ne.s32.totalorder %s784_s28, 0 }
  0xff   : > { %p790_p13 = scmp.ge.s32.totalorder %s568_s19, 2  ;;  %s293_s25 = scalar_lea.sflag [#allocation5], %s292_s9 }
 0x101   : > { %p392_p3 = pnand %p790_p13, %p789_p7 }
 0x103   : > { %543 = dma.done.wait (!%p392_p3), %s293_s25, 128  }
 0x104   : > { %545 = vsyncadd (!%p392_p3), %s293_s25, 4294967168  ;;  %s20_s19 = sadd.s32 1, %s568_s19   ;;  %s791_s14 = smov %s552_s15 }
 0x105   : > { %p17_p6 = scmp.ge.s32.totalorder %s20_s19, 4   ;;  %s792_s15 = smov %s556_s16 }
 0x106   : > { %s793_s16 = smov %s653_s27  ;;  %s794_s17 = smov %s564_s18 }
 0x107   : > { %s795_s18 = smov %s797_s21  ;;  %19 = sbr.rel (!%p17_p6) target bundleno = 8 (0x8), region = 77 }
 0x10e   :  { %298 = vsyncpa [#allocation4], 1 }
 0x10f   :  { %300 = vsyncpa [#allocation4 + $0x1], 1 }
 0x110   :  { %301 = vsyncpa [#allocation5], 1 }
 0x111   :  { %303 = vsyncpa [#allocation5 + $0x1], 1 }

</bundles_post_ra>
